<compile_context>
chip_gen: v7x
topology: tpu7x:2x2x1
jax: 0.10.0
libtpu: 0.0.40
codegen_flags: <defaults>
</compile_context>

<pallas_src>
import functools

import jax
import jax.numpy as jnp
from jax.experimental import pallas as pl
from jax.experimental.pallas import tpu as pltpu


# ----------------------------------------------------------------------------
# small-matrix glue (plain JAX, mirrors the PyTorch helpers exactly)
# ----------------------------------------------------------------------------
def rotation_matrix(axis, theta):
    """Counterclockwise rotation about `axis` by `theta` (same math as torch ref)."""
    axis = axis / jnp.sqrt(jnp.dot(axis, axis))
    a = jnp.cos(theta / 2.0)
    s = -axis * jnp.sin(theta / 2.0)
    b, c, d = s[0], s[1], s[2]
    aa, bb, cc, dd = a * a, b * b, c * c, d * d
    bc, ad, ac, ab, bd, cd = b * c, a * d, a * c, a * b, b * d, c * d
    r0 = jnp.stack([aa + bb - cc - dd, 2 * (bc + ad), 2 * (bd - ac)])
    r1 = jnp.stack([2 * (bc - ad), aa + cc - bb - dd, 2 * (cd + ab)])
    r2 = jnp.stack([2 * (bd + ac), 2 * (cd - ab), aa + dd - bb - cc])
    return jnp.stack([r0, r1, r2]).astype(jnp.float32)


def _axis_rot(axis_name, angle):
    c, s = jnp.cos(angle), jnp.sin(angle)
    one, zero = jnp.ones_like(angle), jnp.zeros_like(angle)
    if axis_name == "X":
        m = [one, zero, zero, zero, c, -s, zero, s, c]
    elif axis_name == "Y":
        m = [c, zero, s, zero, one, zero, -s, zero, c]
    else:  # "Z"
        m = [c, -s, zero, s, c, zero, zero, zero, one]
    return jnp.stack(m).reshape(3, 3)


def euler_angles_to_matrix(euler_angles, convention=("X", "Y", "Z")):
    mats = [_axis_rot(c, e) for c, e in zip(convention, euler_angles)]
    return functools.reduce(jnp.matmul, mats).astype(jnp.float32)


# ----------------------------------------------------------------------------
# Pallas kernel
# ----------------------------------------------------------------------------
LANE = 128      # lane width (vertex index fast axis)
SUB = 8         # sublane granularity
TS_MAX = 1024   # max sublanes per tile -> 3 * 1024 * 128 * 4 B = 1.5 MiB / block


def _verts_kernel(verts_ref, seg_ref, scal_ref, out_ref):
    """Fused per-vertex affine transform, frame-batched.

    verts_ref : (3, TS, 128) VMEM  scaled vertices, coordinate-planar
                (block index is frame-invariant -> stays VMEM-resident while
                 the inner frame grid axis iterates)
    seg_ref   : (2,)  SMEM i32     [vertexStart, vertexEnd)
    scal_ref  : (F, 24) SMEM f32   per frame: M0 (9) | c0 (3) | Dm (9) | dv (3)
                M0 = diag(1,-1,-1) @ objR,  c0 = flip * offsets,
                Dm = M0 @ A_part - M0,      dv = M0 @ t_part
    out_ref   : (3, TS, 128) VMEM  transformed vertices for frame f
                (frame dim of the output block is squeezed)
    """
    ts, nl = verts_ref.shape[1], verts_ref.shape[2]
    f = pl.program_id(1)

    v0 = verts_ref[0]          # (TS, 128)
    v1 = verts_ref[1]
    v2 = verts_ref[2]

    # base transform (applies to every vertex): M0 @ v + c0
    b0 = scal_ref[f, 0] * v0 + scal_ref[f, 1] * v1 + scal_ref[f, 2] * v2 + scal_ref[f, 9]
    b1 = scal_ref[f, 3] * v0 + scal_ref[f, 4] * v1 + scal_ref[f, 5] * v2 + scal_ref[f, 10]
    b2 = scal_ref[f, 6] * v0 + scal_ref[f, 7] * v1 + scal_ref[f, 8] * v2 + scal_ref[f, 11]

    def delta():
        d0 = scal_ref[f, 12] * v0 + scal_ref[f, 13] * v1 + scal_ref[f, 14] * v2 + scal_ref[f, 21]
        d1 = scal_ref[f, 15] * v0 + scal_ref[f, 16] * v1 + scal_ref[f, 17] * v2 + scal_ref[f, 22]
        d2 = scal_ref[f, 18] * v0 + scal_ref[f, 19] * v1 + scal_ref[f, 20] * v2 + scal_ref[f, 23]
        return d0, d1, d2

    # segment bounds rebased to this tile (scalar-unit math only)
    tile_elems = ts * nl
    base = pl.program_id(0) * tile_elems
    lo = seg_ref[0] - base
    hi = seg_ref[1] - base

    fully_outside = jnp.logical_or(hi <= 0, lo >= tile_elems)
    fully_inside = jnp.logical_and(lo <= 0, hi >= tile_elems)
    straddle = jnp.logical_not(jnp.logical_or(fully_outside, fully_inside))

    @pl.when(fully_outside)
    def _():
        out_ref[0] = b0
        out_ref[1] = b1
        out_ref[2] = b2

    @pl.when(fully_inside)
    def _():
        d0, d1, d2 = delta()
        out_ref[0] = b0 + d0
        out_ref[1] = b1 + d1
        out_ref[2] = b2 + d2

    @pl.when(straddle)
    def _():
        sub = jax.lax.broadcasted_iota(jnp.int32, (ts, nl), 0)
        lane = jax.lax.broadcasted_iota(jnp.int32, (ts, nl), 1)
        idx = sub * nl + lane                        # tile-local flat index
        inseg = jnp.logical_and(idx >= lo, idx < hi)
        d0, d1, d2 = delta()
        out_ref[0] = b0 + jnp.where(inseg, d0, 0.0)
        out_ref[1] = b1 + jnp.where(inseg, d1, 0.0)
        out_ref[2] = b2 + jnp.where(inseg, d2, 0.0)


def transform_vertices(verts_planar, seg, scal):
    """Frame-batched vertex transform.

    verts_planar: (3, S, 128) f32, S % 8 == 0 (padded by the caller)
    seg:          (2,) i32   [vertexStart, vertexEnd)
    scal:         (F, 24) f32 per-frame packed scalars (M0|c0|Dm|dv)

    Returns (F, 3, S, 128) f32 — transformed, y/z already negated.
    """
    _, s_pad, nl = verts_planar.shape
    n_frames = scal.shape[0]
    assert nl == LANE and s_pad % SUB == 0

    # pick a tile size: >=2 tiles whenever possible (v7x megacore sharding),
    # capped at TS_MAX sublanes to stay inside v5e's scoped-VMEM default.
    if s_pad <= SUB:
        ts = s_pad
    elif s_pad <= 2 * TS_MAX:
        assert s_pad % (2 * SUB) == 0
        ts = s_pad // 2
    else:
        assert s_pad % TS_MAX == 0
        ts = TS_MAX
    n_tiles = s_pad // ts
    grid = (n_tiles, n_frames)

    smem = pl.BlockSpec(memory_space=pltpu.MemorySpace.SMEM)
    bytes_out = 3 * s_pad * LANE * 4
    cost = pl.CostEstimate(
        flops=int(n_frames) * int(s_pad) * LANE * 40,
        transcendentals=0,
        bytes_accessed=int(bytes_out) * (1 + int(n_frames)),  # verts read once + F writes
    )
    return pl.pallas_call(
        _verts_kernel,
        out_shape=jax.ShapeDtypeStruct((n_frames, 3, s_pad, nl), jnp.float32),
        grid=grid,
        in_specs=[
            pl.BlockSpec((3, ts, nl), lambda i, f: (0, i, 0)),  # frame-invariant
            smem,  # seg
            smem,  # packed per-frame scalars
        ],
        out_specs=pl.BlockSpec((None, 3, ts, nl), lambda i, f: (f, 0, i, 0)),
        compiler_params=pltpu.CompilerParams(
            dimension_semantics=("parallel", "arbitrary")),
        cost_estimate=cost,
    )(verts_planar, seg, scal)


# ----------------------------------------------------------------------------
# JOHMRLite equivalent
# ----------------------------------------------------------------------------
class JOHMRLiteJax:
    def __init__(self, x_offset, y_offset, z_offset, yaw, pitch, roll,
                 part_motion, obj_size, obj_verts, obj_faces, part_idx,
                 rot_o, axis, vertexSegs, faceSegs, rot_type):
        self.rot_type = rot_type
        self.x_offset = float(x_offset)
        self.y_offset = float(y_offset)
        self.z_offset = float(z_offset)

        part_motion = jnp.asarray(part_motion, jnp.float32)
        obj_size = [x / 100.0 for x in obj_size]
        if rot_type[0] == "prismatic":
            part_motion = part_motion / 100.0
        self.part_motion = part_motion
        self.n_frames = int(part_motion.shape[0])

        obj_verts = jnp.asarray(obj_verts, jnp.float32)
        self.obj_faces = jnp.asarray(obj_faces, jnp.int32)

        x_diff = jnp.max(obj_verts[:, 0]) - jnp.min(obj_verts[:, 0])
        y_diff = jnp.max(obj_verts[:, 1]) - jnp.min(obj_verts[:, 1])
        z_diff = jnp.max(obj_verts[:, 2]) - jnp.min(obj_verts[:, 2])
        self.x_ratio = obj_size[0] / x_diff
        self.y_ratio = obj_size[1] / y_diff
        self.z_ratio = obj_size[2] / z_diff

        self.vertexStart = int(vertexSegs[part_idx])
        self.vertexEnd = int(vertexSegs[part_idx + 1])
        self.faceStart = int(faceSegs[part_idx])
        self.faceEnd = int(faceSegs[part_idx + 1])

        rot_o_p = jnp.asarray(rot_o[part_idx], jnp.float32)
        axis_p = jnp.asarray(axis[part_idx], jnp.float32)
        flip = jnp.array([1.0, -1.0, -1.0], jnp.float32)
        rot_o_p = rot_o_p * flip
        axis_p = axis_p * flip

        ratios = jnp.stack([self.x_ratio, self.y_ratio, self.z_ratio])
        self.obj_verts = obj_verts * ratios[None, :]
        self.rot_o = rot_o_p * ratios
        self.axis = axis_p

        euler = jnp.array([pitch, yaw, roll], jnp.float32)
        self.objR = euler_angles_to_matrix(euler, ("X", "Y", "Z"))

        # planar coordinate-major verts: (3, S, 128), vertex k -> (k//128, k%128)
        n = self.obj_verts.shape[0]
        self.n_verts = n
        s_need = -(-n // LANE)                     # sublanes needed
        if s_need <= SUB:
            s_pad = SUB                            # single minimal 8x128 tile
        elif s_need <= 2 * TS_MAX:
            s_pad = -(-s_need // (2 * SUB)) * (2 * SUB)   # multiple of 16 -> 2 tiles
        else:
            s_pad = -(-s_need // TS_MAX) * TS_MAX
        n_pad = s_pad * LANE
        verts_pad = jnp.zeros((n_pad, 3), jnp.float32).at[:n].set(self.obj_verts)
        self.verts_planar = verts_pad.T.reshape(3, s_pad, LANE)
        self.seg = jnp.array([self.vertexStart, self.vertexEnd], jnp.int32)

    # --- per-frame packed scalars: M0 (9) | c0 (3) | Dm (9) | dv (3) ----------
    def _frame_scalars(self, partmotion):
        if self.rot_type[0] == "prismatic":
            # (v - rot_o) + axis*s + rot_o  ==  I @ v + axis*s
            A = jnp.eye(3, dtype=jnp.float32)
            t = self.axis * partmotion
        else:
            part_state = partmotion * 0.0174533
            Rp = rotation_matrix(self.axis, part_state)
            # Rp @ (v - rot_o) + rot_o  ==  Rp @ v + (rot_o - Rp @ rot_o)
            A = Rp
            t = self.rot_o - Rp @ self.rot_o

        off = jnp.array([self.x_offset, self.y_offset, self.z_offset], jnp.float32)
        flip = jnp.array([1.0, -1.0, -1.0], jnp.float32)
        M0 = flip[:, None] * self.objR          # diag(flip) @ objR
        c0 = flip * off
        Dm = M0 @ A - M0                        # delta matrix, only inside segment
        dv = M0 @ t                             # delta translation
        return jnp.concatenate([M0.reshape(9), c0, Dm.reshape(9), dv]).astype(jnp.float32)

    # --- batched forward: all frames in ONE kernel launch, planar output -----
    def forward_all_planar(self, indices=None):
        """Returns (F, 3, S, 128) planar output; vertex tiles are DMA'd once."""
        if indices is None:
            indices = list(range(self.n_frames))
        scal = jnp.stack([self._frame_scalars(self.part_motion[i]) for i in indices])
        return transform_vertices(self.verts_planar, self.seg, scal)

    def planar_to_verts(self, planar_frame):
        """(3, S, 128) planar frame -> (N, 3). Only call when torch layout is needed."""
        return planar_frame.reshape(3, -1).T[: self.n_verts]

    # --- single-frame forward matching the PyTorch module semantics ----------
    def forward(self, index):
        out_planar = self.forward_all_planar([index])        # (1, 3, S, 128)
        obj_verts = self.planar_to_verts(out_planar[0])       # (N, 3)

        off = jnp.array([self.x_offset, self.y_offset, self.z_offset], jnp.float32)
        # NOTE: like the PyTorch reference, _rot_o/_axis get objR + offsets only
        # (no y/z flip) — the flip is applied to the vertices exclusively.
        _rot_o = (self.objR @ self.rot_o[:, None]).T + off[None, :]
        _axis = (self.objR @ self.axis[:, None]).T

        part_verts = obj_verts[self.vertexStart:self.vertexEnd]
        part_faces = self.obj_faces[self.faceStart:self.faceEnd]
        part_faces = part_faces - part_faces.min()

        # TODO(synk): pytorch3d rasterization (silhouette / zbuf via vis_render,
        # Meshes, TexturesVertex) has no Pallas equivalent; geometry outputs only.
        return obj_verts, self.obj_faces, part_verts, part_faces, _rot_o, _axis


# ----------------------------------------------------------------------------
# pure-JAX reference of the vertex math (for correctness checking)
# ----------------------------------------------------------------------------
def reference_obj_verts(model, index):
    verts = model.obj_verts
    partmotion = model.part_motion[index]
    if model.rot_type[0] == "prismatic":
        seg = verts[model.vertexStart:model.vertexEnd] - model.rot_o
        seg = seg + model.axis * partmotion
    else:
        part_state = partmotion * 0.0174533
        Rp = rotation_matrix(model.axis, part_state)
        seg = verts[model.vertexStart:model.vertexEnd] - model.rot_o
        seg = (Rp @ seg.T).T
    verts = verts.at[model.vertexStart:model.vertexEnd].set(seg + model.rot_o)
    verts = (model.objR @ verts.T).T
    verts = verts + jnp.array([model.x_offset, model.y_offset, model.z_offset])
    verts = verts * jnp.array([1.0, -1.0, -1.0])
    return verts


if __name__ == "__main__":
    key = jax.random.PRNGKey(0)
    k1, k2 = jax.random.split(key)

    N_VERTS, N_FACES, N_FRAMES = 500, 200, 8
    obj_verts = jax.random.uniform(k1, (N_VERTS, 3), jnp.float32, -1.0, 1.0)
    obj_faces = jax.random.randint(k2, (N_FACES, 3), 0, N_VERTS).astype(jnp.int32)

    part_motion = jnp.linspace(-30.0, 30.0, N_FRAMES)      # degrees per frame
    vertexSegs = [0, 200, N_VERTS]
    faceSegs = [0, 80, N_FACES]
    part_idx = 1
    rot_o = [jnp.array([0.1, 0.2, 0.3]), jnp.array([0.4, -0.1, 0.2])]
    axis = [jnp.array([1.0, 0.0, 0.0]), jnp.array([0.0, 1.0, 0.5])]

    model = JOHMRLiteJax(
        x_offset=0.05, y_offset=-0.1, z_offset=1.5,
        yaw=0.3, pitch=-0.2, roll=0.1,
        part_motion=part_motion, obj_size=[60.0, 40.0, 30.0],
        obj_verts=obj_verts, obj_faces=obj_faces, part_idx=part_idx,
        rot_o=rot_o, axis=axis, vertexSegs=vertexSegs, faceSegs=faceSegs,
        rot_type=["revolute"],
    )

    # frame-batched path: all frames in one kernel launch, planar output
    planar_all = jax.block_until_ready(model.forward_all_planar())
    assert planar_all.shape[0] == N_FRAMES
    for f in (0, 3, N_FRAMES - 1):
        got = model.planar_to_verts(planar_all[f])
        ref = reference_obj_verts(model, f)
        assert jnp.max(jnp.abs(got - ref)) < 1e-4, f"frame {f} mismatch"

    # single-frame API (matches the PyTorch forward semantics, minus rendering)
    outs = jax.block_until_ready(model.forward(index=3))
    obj_v, obj_f, part_v, part_f, ro, ax = outs
    ref3 = jax.block_until_ready(reference_obj_verts(model, 3))
    assert obj_v.shape == (N_VERTS, 3)
    assert part_v.shape == (vertexSegs[2] - vertexSegs[1], 3)
    assert jnp.max(jnp.abs(obj_v - ref3)) < 1e-4, "mismatch vs pure-JAX reference"

    # quick check of a prismatic instance as well
    model_p = JOHMRLiteJax(
        x_offset=0.05, y_offset=-0.1, z_offset=1.5,
        yaw=0.3, pitch=-0.2, roll=0.1,
        part_motion=part_motion, obj_size=[60.0, 40.0, 30.0],
        obj_verts=obj_verts, obj_faces=obj_faces, part_idx=part_idx,
        rot_o=rot_o, axis=axis, vertexSegs=vertexSegs, faceSegs=faceSegs,
        rot_type=["prismatic"],
    )
    obj_vp = jax.block_until_ready(model_p.forward(index=5))[0]
    ref_p = jax.block_until_ready(reference_obj_verts(model_p, 5))
    assert jnp.max(jnp.abs(obj_vp - ref_p)) < 1e-4, "prismatic mismatch"

    print("KERNEL_OK")
</pallas_src>

<mosaic_0001>
module attributes {stable_mosaic.version = 11 : i64} {
  func.func @_verts_kernel(%arg0: i32, %arg1: i32, %arg2: memref<3x8x128xf32, #tpu.memory_space<vmem>>, %arg3: memref<2xi32, #tpu.memory_space<smem>>, %arg4: memref<8x24xf32, #tpu.memory_space<smem>>, %arg5: memref<1x3x8x128xf32, #tpu.memory_space<vmem>>) attributes {dimension_semantics = [#tpu.dimension_semantics<parallel>, #tpu.dimension_semantics<arbitrary>], iteration_bounds = array<i64: 1, 8>, scalar_prefetch = 0 : i64, scratch_operands = 0 : i64, tpu.core_type = #tpu.core_type<tc>, window_params = [{transform_indices = @transform_0, window_bounds = array<i64: 3, 8, 128>}, {transform_indices = @transform_1, window_bounds = array<i64: 2>}, {transform_indices = @transform_2, window_bounds = array<i64: 8, 24>}, {transform_indices = @transform_3, window_bounds = array<i64: 1, 3, 8, 128>}]} {
    %c0 = arith.constant 0 : index
    %c0_0 = arith.constant 0 : index
    %c0_1 = arith.constant 0 : index
    %0 = vector.load %arg2[%c0, %c0_0, %c0_1] : memref<3x8x128xf32, #tpu.memory_space<vmem>>, vector<1x8x128xf32>
    %1 = vector.shape_cast %0 : vector<1x8x128xf32> to vector<8x128xf32>
    %c1 = arith.constant 1 : index
    %c0_2 = arith.constant 0 : index
    %c0_3 = arith.constant 0 : index
    %2 = vector.load %arg2[%c1, %c0_2, %c0_3] : memref<3x8x128xf32, #tpu.memory_space<vmem>>, vector<1x8x128xf32>
    %3 = vector.shape_cast %2 : vector<1x8x128xf32> to vector<8x128xf32>
    %c2 = arith.constant 2 : index
    %c0_4 = arith.constant 0 : index
    %c0_5 = arith.constant 0 : index
    %4 = vector.load %arg2[%c2, %c0_4, %c0_5] : memref<3x8x128xf32, #tpu.memory_space<vmem>>, vector<1x8x128xf32>
    %5 = vector.shape_cast %4 : vector<1x8x128xf32> to vector<8x128xf32>
    %6 = arith.index_cast %arg1 : i32 to index
    %c0_6 = arith.constant 0 : index
    %7 = memref.load %arg4[%6, %c0_6] : memref<8x24xf32, #tpu.memory_space<smem>>
    %8 = vector.broadcast %7 : f32 to vector<8x128xf32>
    %9 = arith.mulf %8, %1 : vector<8x128xf32>
    %10 = arith.index_cast %arg1 : i32 to index
    %c1_7 = arith.constant 1 : index
    %11 = memref.load %arg4[%10, %c1_7] : memref<8x24xf32, #tpu.memory_space<smem>>
    %12 = vector.broadcast %11 : f32 to vector<8x128xf32>
    %13 = arith.mulf %12, %3 : vector<8x128xf32>
    %14 = arith.addf %9, %13 : vector<8x128xf32>
    %15 = arith.index_cast %arg1 : i32 to index
    %c2_8 = arith.constant 2 : index
    %16 = memref.load %arg4[%15, %c2_8] : memref<8x24xf32, #tpu.memory_space<smem>>
    %17 = vector.broadcast %16 : f32 to vector<8x128xf32>
    %18 = arith.mulf %17, %5 : vector<8x128xf32>
    %19 = arith.addf %14, %18 : vector<8x128xf32>
    %20 = arith.index_cast %arg1 : i32 to index
    %c9 = arith.constant 9 : index
    %21 = memref.load %arg4[%20, %c9] : memref<8x24xf32, #tpu.memory_space<smem>>
    %22 = vector.broadcast %21 : f32 to vector<8x128xf32>
    %23 = arith.addf %19, %22 : vector<8x128xf32>
    %24 = arith.index_cast %arg1 : i32 to index
    %c3 = arith.constant 3 : index
    %25 = memref.load %arg4[%24, %c3] : memref<8x24xf32, #tpu.memory_space<smem>>
    %26 = vector.broadcast %25 : f32 to vector<8x128xf32>
    %27 = arith.mulf %26, %1 : vector<8x128xf32>
    %28 = arith.index_cast %arg1 : i32 to index
    %c4 = arith.constant 4 : index
    %29 = memref.load %arg4[%28, %c4] : memref<8x24xf32, #tpu.memory_space<smem>>
    %30 = vector.broadcast %29 : f32 to vector<8x128xf32>
    %31 = arith.mulf %30, %3 : vector<8x128xf32>
    %32 = arith.addf %27, %31 : vector<8x128xf32>
    %33 = arith.index_cast %arg1 : i32 to index
    %c5 = arith.constant 5 : index
    %34 = memref.load %arg4[%33, %c5] : memref<8x24xf32, #tpu.memory_space<smem>>
    %35 = vector.broadcast %34 : f32 to vector<8x128xf32>
    %36 = arith.mulf %35, %5 : vector<8x128xf32>
    %37 = arith.addf %32, %36 : vector<8x128xf32>
    %38 = arith.index_cast %arg1 : i32 to index
    %c10 = arith.constant 10 : index
    %39 = memref.load %arg4[%38, %c10] : memref<8x24xf32, #tpu.memory_space<smem>>
    %40 = vector.broadcast %39 : f32 to vector<8x128xf32>
    %41 = arith.addf %37, %40 : vector<8x128xf32>
    %42 = arith.index_cast %arg1 : i32 to index
    %c6 = arith.constant 6 : index
    %43 = memref.load %arg4[%42, %c6] : memref<8x24xf32, #tpu.memory_space<smem>>
    %44 = vector.broadcast %43 : f32 to vector<8x128xf32>
    %45 = arith.mulf %44, %1 : vector<8x128xf32>
    %46 = arith.index_cast %arg1 : i32 to index
    %c7 = arith.constant 7 : index
    %47 = memref.load %arg4[%46, %c7] : memref<8x24xf32, #tpu.memory_space<smem>>
    %48 = vector.broadcast %47 : f32 to vector<8x128xf32>
    %49 = arith.mulf %48, %3 : vector<8x128xf32>
    %50 = arith.addf %45, %49 : vector<8x128xf32>
    %51 = arith.index_cast %arg1 : i32 to index
    %c8 = arith.constant 8 : index
    %52 = memref.load %arg4[%51, %c8] : memref<8x24xf32, #tpu.memory_space<smem>>
    %53 = vector.broadcast %52 : f32 to vector<8x128xf32>
    %54 = arith.mulf %53, %5 : vector<8x128xf32>
    %55 = arith.addf %50, %54 : vector<8x128xf32>
    %56 = arith.index_cast %arg1 : i32 to index
    %c11 = arith.constant 11 : index
    %57 = memref.load %arg4[%56, %c11] : memref<8x24xf32, #tpu.memory_space<smem>>
    %58 = vector.broadcast %57 : f32 to vector<8x128xf32>
    %59 = arith.addf %55, %58 : vector<8x128xf32>
    %c1024_i32 = arith.constant 1024 : i32
    %60 = arith.muli %arg0, %c1024_i32 : i32
    %c0_9 = arith.constant 0 : index
    %61 = memref.load %arg3[%c0_9] : memref<2xi32, #tpu.memory_space<smem>>
    %62 = arith.subi %61, %60 : i32
    %c1_10 = arith.constant 1 : index
    %63 = memref.load %arg3[%c1_10] : memref<2xi32, #tpu.memory_space<smem>>
    %64 = arith.subi %63, %60 : i32
    %c0_i32 = arith.constant 0 : i32
    %65 = arith.cmpi sle, %64, %c0_i32 : i32
    %c1024_i32_11 = arith.constant 1024 : i32
    %66 = arith.cmpi sge, %62, %c1024_i32_11 : i32
    %67 = arith.ori %65, %66 : i1
    %c0_i32_12 = arith.constant 0 : i32
    %68 = arith.cmpi sle, %62, %c0_i32_12 : i32
    %c1024_i32_13 = arith.constant 1024 : i32
    %69 = arith.cmpi sge, %64, %c1024_i32_13 : i32
    %70 = arith.andi %68, %69 : i1
    %71 = arith.ori %67, %70 : i1
    %true = arith.constant true
    %72 = arith.xori %71, %true : i1
    %73 = arith.extui %67 : i1 to i32
    %c0_i32_14 = arith.constant 0 : i32
    %74 = arith.cmpi ne, %73, %c0_i32_14 : i32
    scf.if %74 {
      %c0_17 = arith.constant 0 : index
      %c0_18 = arith.constant 0 : index
      %c0_19 = arith.constant 0 : index
      %c0_20 = arith.constant 0 : index
      %79 = vector.load %arg5[%c0_17, %c0_18, %c0_19, %c0_20] : memref<1x3x8x128xf32, #tpu.memory_space<vmem>>, vector<1x1x8x128xf32>
      %80 = vector.shape_cast %79 : vector<1x1x8x128xf32> to vector<8x128xf32>
      %81 = vector.shape_cast %23 : vector<8x128xf32> to vector<1x1x8x128xf32>
      tpu.vector_store %arg5[%c0_17, %c0_18, %c0_19, %c0_20], %81 {strides = array<i32>} : memref<1x3x8x128xf32, #tpu.memory_space<vmem>>, vector<1x1x8x128xf32>,
      %c0_21 = arith.constant 0 : index
      %c1_22 = arith.constant 1 : index
      %c0_23 = arith.constant 0 : index
      %c0_24 = arith.constant 0 : index
      %82 = vector.load %arg5[%c0_21, %c1_22, %c0_23, %c0_24] : memref<1x3x8x128xf32, #tpu.memory_space<vmem>>, vector<1x1x8x128xf32>
      %83 = vector.shape_cast %82 : vector<1x1x8x128xf32> to vector<8x128xf32>
      %84 = vector.shape_cast %41 : vector<8x128xf32> to vector<1x1x8x128xf32>
      tpu.vector_store %arg5[%c0_21, %c1_22, %c0_23, %c0_24], %84 {strides = array<i32>} : memref<1x3x8x128xf32, #tpu.memory_space<vmem>>, vector<1x1x8x128xf32>,
      %c0_25 = arith.constant 0 : index
      %c2_26 = arith.constant 2 : index
      %c0_27 = arith.constant 0 : index
      %c0_28 = arith.constant 0 : index
      %85 = vector.load %arg5[%c0_25, %c2_26, %c0_27, %c0_28] : memref<1x3x8x128xf32, #tpu.memory_space<vmem>>, vector<1x1x8x128xf32>
      %86 = vector.shape_cast %85 : vector<1x1x8x128xf32> to vector<8x128xf32>
      %87 = vector.shape_cast %59 : vector<8x128xf32> to vector<1x1x8x128xf32>
      tpu.vector_store %arg5[%c0_25, %c2_26, %c0_27, %c0_28], %87 {strides = array<i32>} : memref<1x3x8x128xf32, #tpu.memory_space<vmem>>, vector<1x1x8x128xf32>,
    } else {
    }
    %75 = arith.extui %70 : i1 to i32
    %c0_i32_15 = arith.constant 0 : i32
    %76 = arith.cmpi ne, %75, %c0_i32_15 : i32
    scf.if %76 {
      %79 = arith.index_cast %arg1 : i32 to index
      %c12 = arith.constant 12 : index
      %80 = memref.load %arg4[%79, %c12] : memref<8x24xf32, #tpu.memory_space<smem>>
      %81 = vector.broadcast %80 : f32 to vector<8x128xf32>
      %82 = arith.mulf %81, %1 : vector<8x128xf32>
      %83 = arith.index_cast %arg1 : i32 to index
      %c13 = arith.constant 13 : index
      %84 = memref.load %arg4[%83, %c13] : memref<8x24xf32, #tpu.memory_space<smem>>
      %85 = vector.broadcast %84 : f32 to vector<8x128xf32>
      %86 = arith.mulf %85, %3 : vector<8x128xf32>
      %87 = arith.addf %82, %86 : vector<8x128xf32>
      %88 = arith.index_cast %arg1 : i32 to index
      %c14 = arith.constant 14 : index
      %89 = memref.load %arg4[%88, %c14] : memref<8x24xf32, #tpu.memory_space<smem>>
      %90 = vector.broadcast %89 : f32 to vector<8x128xf32>
      %91 = arith.mulf %90, %5 : vector<8x128xf32>
      %92 = arith.addf %87, %91 : vector<8x128xf32>
      %93 = arith.index_cast %arg1 : i32 to index
      %c21 = arith.constant 21 : index
      %94 = memref.load %arg4[%93, %c21] : memref<8x24xf32, #tpu.memory_space<smem>>
      %95 = vector.broadcast %94 : f32 to vector<8x128xf32>
      %96 = arith.addf %92, %95 : vector<8x128xf32>
      %97 = arith.index_cast %arg1 : i32 to index
      %c15 = arith.constant 15 : index
      %98 = memref.load %arg4[%97, %c15] : memref<8x24xf32, #tpu.memory_space<smem>>
      %99 = vector.broadcast %98 : f32 to vector<8x128xf32>
      %100 = arith.mulf %99, %1 : vector<8x128xf32>
      %101 = arith.index_cast %arg1 : i32 to index
      %c16 = arith.constant 16 : index
      %102 = memref.load %arg4[%101, %c16] : memref<8x24xf32, #tpu.memory_space<smem>>
      %103 = vector.broadcast %102 : f32 to vector<8x128xf32>
      %104 = arith.mulf %103, %3 : vector<8x128xf32>
      %105 = arith.addf %100, %104 : vector<8x128xf32>
      %106 = arith.index_cast %arg1 : i32 to index
      %c17 = arith.constant 17 : index
      %107 = memref.load %arg4[%106, %c17] : memref<8x24xf32, #tpu.memory_space<smem>>
      %108 = vector.broadcast %107 : f32 to vector<8x128xf32>
      %109 = arith.mulf %108, %5 : vector<8x128xf32>
      %110 = arith.addf %105, %109 : vector<8x128xf32>
      %111 = arith.index_cast %arg1 : i32 to index
      %c22 = arith.constant 22 : index
      %112 = memref.load %arg4[%111, %c22] : memref<8x24xf32, #tpu.memory_space<smem>>
      %113 = vector.broadcast %112 : f32 to vector<8x128xf32>
      %114 = arith.addf %110, %113 : vector<8x128xf32>
      %115 = arith.index_cast %arg1 : i32 to index
      %c18 = arith.constant 18 : index
      %116 = memref.load %arg4[%115, %c18] : memref<8x24xf32, #tpu.memory_space<smem>>
      %117 = vector.broadcast %116 : f32 to vector<8x128xf32>
      %118 = arith.mulf %117, %1 : vector<8x128xf32>
      %119 = arith.index_cast %arg1 : i32 to index
      %c19 = arith.constant 19 : index
      %120 = memref.load %arg4[%119, %c19] : memref<8x24xf32, #tpu.memory_space<smem>>
      %121 = vector.broadcast %120 : f32 to vector<8x128xf32>
      %122 = arith.mulf %121, %3 : vector<8x128xf32>
      %123 = arith.addf %118, %122 : vector<8x128xf32>
      %124 = arith.index_cast %arg1 : i32 to index
      %c20 = arith.constant 20 : index
      %125 = memref.load %arg4[%124, %c20] : memref<8x24xf32, #tpu.memory_space<smem>>
      %126 = vector.broadcast %125 : f32 to vector<8x128xf32>
      %127 = arith.mulf %126, %5 : vector<8x128xf32>
      %128 = arith.addf %123, %127 : vector<8x128xf32>
      %129 = arith.index_cast %arg1 : i32 to index
      %c23 = arith.constant 23 : index
      %130 = memref.load %arg4[%129, %c23] : memref<8x24xf32, #tpu.memory_space<smem>>
      %131 = vector.broadcast %130 : f32 to vector<8x128xf32>
      %132 = arith.addf %128, %131 : vector<8x128xf32>
      %133 = arith.addf %23, %96 : vector<8x128xf32>
      %c0_17 = arith.constant 0 : index
      %c0_18 = arith.constant 0 : index
      %c0_19 = arith.constant 0 : index
      %c0_20 = arith.constant 0 : index
      %134 = vector.load %arg5[%c0_17, %c0_18, %c0_19, %c0_20] : memref<1x3x8x128xf32, #tpu.memory_space<vmem>>, vector<1x1x8x128xf32>
      %135 = vector.shape_cast %134 : vector<1x1x8x128xf32> to vector<8x128xf32>
      %136 = vector.shape_cast %133 : vector<8x128xf32> to vector<1x1x8x128xf32>
      tpu.vector_store %arg5[%c0_17, %c0_18, %c0_19, %c0_20], %136 {strides = array<i32>} : memref<1x3x8x128xf32, #tpu.memory_space<vmem>>, vector<1x1x8x128xf32>,
      %137 = arith.addf %41, %114 : vector<8x128xf32>
      %c0_21 = arith.constant 0 : index
      %c1_22 = arith.constant 1 : index
      %c0_23 = arith.constant 0 : index
      %c0_24 = arith.constant 0 : index
      %138 = vector.load %arg5[%c0_21, %c1_22, %c0_23, %c0_24] : memref<1x3x8x128xf32, #tpu.memory_space<vmem>>, vector<1x1x8x128xf32>
      %139 = vector.shape_cast %138 : vector<1x1x8x128xf32> to vector<8x128xf32>
      %140 = vector.shape_cast %137 : vector<8x128xf32> to vector<1x1x8x128xf32>
      tpu.vector_store %arg5[%c0_21, %c1_22, %c0_23, %c0_24], %140 {strides = array<i32>} : memref<1x3x8x128xf32, #tpu.memory_space<vmem>>, vector<1x1x8x128xf32>,
      %141 = arith.addf %59, %132 : vector<8x128xf32>
      %c0_25 = arith.constant 0 : index
      %c2_26 = arith.constant 2 : index
      %c0_27 = arith.constant 0 : index
      %c0_28 = arith.constant 0 : index
      %142 = vector.load %arg5[%c0_25, %c2_26, %c0_27, %c0_28] : memref<1x3x8x128xf32, #tpu.memory_space<vmem>>, vector<1x1x8x128xf32>
      %143 = vector.shape_cast %142 : vector<1x1x8x128xf32> to vector<8x128xf32>
      %144 = vector.shape_cast %141 : vector<8x128xf32> to vector<1x1x8x128xf32>
      tpu.vector_store %arg5[%c0_25, %c2_26, %c0_27, %c0_28], %144 {strides = array<i32>} : memref<1x3x8x128xf32, #tpu.memory_space<vmem>>, vector<1x1x8x128xf32>,
    } else {
    }
    %77 = arith.extui %72 : i1 to i32
    %c0_i32_16 = arith.constant 0 : i32
    %78 = arith.cmpi ne, %77, %c0_i32_16 : i32
    scf.if %78 {
      %79 = tpu.iota {dimensions = array<i32: 0>} : vector<8x128xi32>
      %80 = tpu.iota {dimensions = array<i32: 1>} : vector<8x128xi32>
      %c128_i32 = arith.constant 128 : i32
      %81 = vector.broadcast %c128_i32 : i32 to vector<8x128xi32>
      %82 = arith.muli %79, %81 : vector<8x128xi32>
      %83 = arith.addi %82, %80 : vector<8x128xi32>
      %84 = vector.broadcast %62 : i32 to vector<8x128xi32>
      %85 = arith.cmpi sge, %83, %84 : vector<8x128xi32>
      %86 = vector.broadcast %64 : i32 to vector<8x128xi32>
      %87 = arith.cmpi slt, %83, %86 : vector<8x128xi32>
      %88 = arith.andi %85, %87 : vector<8x128xi1>
      %89 = arith.index_cast %arg1 : i32 to index
      %c12 = arith.constant 12 : index
      %90 = memref.load %arg4[%89, %c12] : memref<8x24xf32, #tpu.memory_space<smem>>
      %91 = vector.broadcast %90 : f32 to vector<8x128xf32>
      %92 = arith.mulf %91, %1 : vector<8x128xf32>
      %93 = arith.index_cast %arg1 : i32 to index
      %c13 = arith.constant 13 : index
      %94 = memref.load %arg4[%93, %c13] : memref<8x24xf32, #tpu.memory_space<smem>>
      %95 = vector.broadcast %94 : f32 to vector<8x128xf32>
      %96 = arith.mulf %95, %3 : vector<8x128xf32>
      %97 = arith.addf %92, %96 : vector<8x128xf32>
      %98 = arith.index_cast %arg1 : i32 to index
      %c14 = arith.constant 14 : index
      %99 = memref.load %arg4[%98, %c14] : memref<8x24xf32, #tpu.memory_space<smem>>
      %100 = vector.broadcast %99 : f32 to vector<8x128xf32>
      %101 = arith.mulf %100, %5 : vector<8x128xf32>
      %102 = arith.addf %97, %101 : vector<8x128xf32>
      %103 = arith.index_cast %arg1 : i32 to index
      %c21 = arith.constant 21 : index
      %104 = memref.load %arg4[%103, %c21] : memref<8x24xf32, #tpu.memory_space<smem>>
      %105 = vector.broadcast %104 : f32 to vector<8x128xf32>
      %106 = arith.addf %102, %105 : vector<8x128xf32>
      %107 = arith.index_cast %arg1 : i32 to index
      %c15 = arith.constant 15 : index
      %108 = memref.load %arg4[%107, %c15] : memref<8x24xf32, #tpu.memory_space<smem>>
      %109 = vector.broadcast %108 : f32 to vector<8x128xf32>
      %110 = arith.mulf %109, %1 : vector<8x128xf32>
      %111 = arith.index_cast %arg1 : i32 to index
      %c16 = arith.constant 16 : index
      %112 = memref.load %arg4[%111, %c16] : memref<8x24xf32, #tpu.memory_space<smem>>
      %113 = vector.broadcast %112 : f32 to vector<8x128xf32>
      %114 = arith.mulf %113, %3 : vector<8x128xf32>
      %115 = arith.addf %110, %114 : vector<8x128xf32>
      %116 = arith.index_cast %arg1 : i32 to index
      %c17 = arith.constant 17 : index
      %117 = memref.load %arg4[%116, %c17] : memref<8x24xf32, #tpu.memory_space<smem>>
      %118 = vector.broadcast %117 : f32 to vector<8x128xf32>
      %119 = arith.mulf %118, %5 : vector<8x128xf32>
      %120 = arith.addf %115, %119 : vector<8x128xf32>
      %121 = arith.index_cast %arg1 : i32 to index
      %c22 = arith.constant 22 : index
      %122 = memref.load %arg4[%121, %c22] : memref<8x24xf32, #tpu.memory_space<smem>>
      %123 = vector.broadcast %122 : f32 to vector<8x128xf32>
      %124 = arith.addf %120, %123 : vector<8x128xf32>
      %125 = arith.index_cast %arg1 : i32 to index
      %c18 = arith.constant 18 : index
      %126 = memref.load %arg4[%125, %c18] : memref<8x24xf32, #tpu.memory_space<smem>>
      %127 = vector.broadcast %126 : f32 to vector<8x128xf32>
      %128 = arith.mulf %127, %1 : vector<8x128xf32>
      %129 = arith.index_cast %arg1 : i32 to index
      %c19 = arith.constant 19 : index
      %130 = memref.load %arg4[%129, %c19] : memref<8x24xf32, #tpu.memory_space<smem>>
      %131 = vector.broadcast %130 : f32 to vector<8x128xf32>
      %132 = arith.mulf %131, %3 : vector<8x128xf32>
      %133 = arith.addf %128, %132 : vector<8x128xf32>
      %134 = arith.index_cast %arg1 : i32 to index
      %c20 = arith.constant 20 : index
      %135 = memref.load %arg4[%134, %c20] : memref<8x24xf32, #tpu.memory_space<smem>>
      %136 = vector.broadcast %135 : f32 to vector<8x128xf32>
      %137 = arith.mulf %136, %5 : vector<8x128xf32>
      %138 = arith.addf %133, %137 : vector<8x128xf32>
      %139 = arith.index_cast %arg1 : i32 to index
      %c23 = arith.constant 23 : index
      %140 = memref.load %arg4[%139, %c23] : memref<8x24xf32, #tpu.memory_space<smem>>
      %141 = vector.broadcast %140 : f32 to vector<8x128xf32>
      %142 = arith.addf %138, %141 : vector<8x128xf32>
      %cst = arith.constant 0.000000e+00 : f32
      %143 = vector.broadcast %cst : f32 to vector<8x128xf32>
      %144 = arith.select %88, %106, %143 : vector<8x128xi1>, vector<8x128xf32>
      %145 = arith.addf %23, %144 : vector<8x128xf32>
      %c0_17 = arith.constant 0 : index
      %c0_18 = arith.constant 0 : index
      %c0_19 = arith.constant 0 : index
      %c0_20 = arith.constant 0 : index
      %146 = vector.load %arg5[%c0_17, %c0_18, %c0_19, %c0_20] : memref<1x3x8x128xf32, #tpu.memory_space<vmem>>, vector<1x1x8x128xf32>
      %147 = vector.shape_cast %146 : vector<1x1x8x128xf32> to vector<8x128xf32>
      %148 = vector.shape_cast %145 : vector<8x128xf32> to vector<1x1x8x128xf32>
      tpu.vector_store %arg5[%c0_17, %c0_18, %c0_19, %c0_20], %148 {strides = array<i32>} : memref<1x3x8x128xf32, #tpu.memory_space<vmem>>, vector<1x1x8x128xf32>,
      %cst_21 = arith.constant 0.000000e+00 : f32
      %149 = vector.broadcast %cst_21 : f32 to vector<8x128xf32>
      %150 = arith.select %88, %124, %149 : vector<8x128xi1>, vector<8x128xf32>
      %151 = arith.addf %41, %150 : vector<8x128xf32>
      %c0_22 = arith.constant 0 : index
      %c1_23 = arith.constant 1 : index
      %c0_24 = arith.constant 0 : index
      %c0_25 = arith.constant 0 : index
      %152 = vector.load %arg5[%c0_22, %c1_23, %c0_24, %c0_25] : memref<1x3x8x128xf32, #tpu.memory_space<vmem>>, vector<1x1x8x128xf32>
      %153 = vector.shape_cast %152 : vector<1x1x8x128xf32> to vector<8x128xf32>
      %154 = vector.shape_cast %151 : vector<8x128xf32> to vector<1x1x8x128xf32>
      tpu.vector_store %arg5[%c0_22, %c1_23, %c0_24, %c0_25], %154 {strides = array<i32>} : memref<1x3x8x128xf32, #tpu.memory_space<vmem>>, vector<1x1x8x128xf32>,
      %cst_26 = arith.constant 0.000000e+00 : f32
      %155 = vector.broadcast %cst_26 : f32 to vector<8x128xf32>
      %156 = arith.select %88, %142, %155 : vector<8x128xi1>, vector<8x128xf32>
      %157 = arith.addf %59, %156 : vector<8x128xf32>
      %c0_27 = arith.constant 0 : index
      %c2_28 = arith.constant 2 : index
      %c0_29 = arith.constant 0 : index
      %c0_30 = arith.constant 0 : index
      %158 = vector.load %arg5[%c0_27, %c2_28, %c0_29, %c0_30] : memref<1x3x8x128xf32, #tpu.memory_space<vmem>>, vector<1x1x8x128xf32>
      %159 = vector.shape_cast %158 : vector<1x1x8x128xf32> to vector<8x128xf32>
      %160 = vector.shape_cast %157 : vector<8x128xf32> to vector<1x1x8x128xf32>
      tpu.vector_store %arg5[%c0_27, %c2_28, %c0_29, %c0_30], %160 {strides = array<i32>} : memref<1x3x8x128xf32, #tpu.memory_space<vmem>>, vector<1x1x8x128xf32>,
    } else {
    }
    return
  }
  func.func @transform_0(%arg0: i32, %arg1: i32) -> (i32, i32, i32) {
    %c0_i32 = arith.constant 0 : i32
    %c0_i32_0 = arith.constant 0 : i32
    %c0_i32_1 = arith.constant 0 : i32
    return %c0_i32, %arg0, %c0_i32_0 : i32, i32, i32
  }
  func.func @transform_1(%arg0: i32, %arg1: i32) -> i32 {
    %c0_i32 = arith.constant 0 : i32
    %c0_i32_0 = arith.constant 0 : i32
    return %c0_i32 : i32
  }
  func.func @transform_2(%arg0: i32, %arg1: i32) -> (i32, i32) {
    %c0_i32 = arith.constant 0 : i32
    %c0_i32_0 = arith.constant 0 : i32
    %c0_i32_1 = arith.constant 0 : i32
    return %c0_i32, %c0_i32_0 : i32, i32
  }
  func.func @transform_3(%arg0: i32, %arg1: i32) -> (i32, i32, i32, i32) {
    %c0_i32 = arith.constant 0 : i32
    %c0_i32_0 = arith.constant 0 : i32
    %c0_i32_1 = arith.constant 0 : i32
    return %arg1, %c0_i32, %arg0, %c0_i32_0 : i32, i32, i32, i32
  }
}

</mosaic_0001>

<bundles_post_ra>
// kernel: tpu_custom_call.1
= control target key start
LH: loop header
LB: loop body
LE: loop exit
PB: predicated region body
PF: predicated region fallthrough
CT: control target
= control target key end

     0   :  { %s1179_s0 = inlined_call_operand.hbm [shape: f32[3,8,128], index: 0, kind: input, shape index: {}]   ;;  %s1180_s1 = inlined_call_operand.vmem [shape: s32[2], index: 1, kind: input, shape index: {}]   ;;  %s1181_s2 = inlined_call_operand.hbm [shape: f32[8,24], index: 2, kind: input, shape index: {}]   ;;  %s1182_s3 = inlined_call_operand.hbm [shape: f32[8,3,8,128], index: 3, kind: output, shape index: {}]  }
   0x1   :  { %1189 = sst [smem:[#allocation15_spill]] %s1179_s0 }
   0x2   :  { %1190 = sst [smem:[#allocation16_spill]] %s1180_s1 }
   0x3   :  { %1191 = sst [smem:[#allocation17_spill]] %s1181_s2 }
   0x4   :  { %8 = vsyncpa [#allocation3], 0 }
   0x5   :  { %9 = vsyncpa [#allocation6], 0 }
   0x6   :  { %10 = vsyncpa [#allocation5], 0 }
   0x7   :  { %11 = vsyncpa [#allocation4], 0 }
   0x8   :  { %13 = vsyncpa [#allocation4 + $0x1], 0  ;;  %s835_s12 = smov 0   ;;  %s837_s13 = smov 0  }
   0x9   :  { %s839_s14 = smov 0   ;;  %s841_s15 = smov 0  }
   0xa   :  { %s843_s16 = smov 0   ;;  %s845_s17 = smov 0  }
   0xb LB: > { %s546_s18 = sadd.s32 4294967295, %s805_s17   ;;  %s547_s19 = sadd.s32 4294967294, %s805_s17   ;;  %s805_s17 = sphi %s845_s17, %s19_s17   ;;  %s801_s16 = sphi %s843_s16, %s1214_s16   ;;  %s797_s15 = sphi %s841_s15, %s1213_s15   ;;  %s793_s14 = sphi %s839_s14, %s1212_s14   ;;  %s789_s13 = sphi %s837_s13, %s1211_s13   ;;  %s785_s12 = sphi %s835_s12, %s1210_s12  }
   0xc   : > { %s28_s20 = sadd.s32 1, %s801_s16  ;;  %s108_s21 = sadd.s32 1, %s793_s14 }
   0xd   : > { %p29_p0 = scmp.ge.s32.totalorder %s28_s20, 8  ;;  %p118_p1 = scmp.ne.s32.totalorder %s793_s14, %s789_s13 }
   0xe   : > { %p119_p2 = scmp.eq.s32.totalorder %s546_s18, 7  ;;  %p124_p3 = scmp.ne.s32.totalorder %s789_s13, %s785_s12 }
   0xf   : > { %s1216_s20 = smov (%p29_p0, %s28_s20), 0  ;;  %p125_p5 = scmp.eq.s32.totalorder %s547_s19, 7 }
  0x10   : > { %1192 = sst [smem:[#allocation14_spill]] %s1216_s20  ;;  %p875_p4 = por %p119_p2, %p118_p1 }
  0x11   : > { %s103_s23 = ssub.s32 %s801_s16, %s1216_s20  ;;  %p548_p6 = scmp.ge.s32.totalorder %s805_s17, 1 }
  0x12   : > { %s1193_s22 = scalar_select %p875_p4, 1, 0 }
  0x13   : > { %p106_p7 = scmp.eq.s32.totalorder %s103_s23, 0  ;;  %p882_p8 = por %p125_p5, %p124_p3 }
  0x14   : > { %p132_p9 = scmp.lt.s32.totalorder %s805_s17, 9  ;;  %p894_p11 = scmp.eq.s32.totalorder %s546_s18, 0 }
  0x15   : > { %s1194_s24 = scalar_select %p882_p8, 1, 0 }
  0x16   : > { %s888_s25 = scalar_select %p106_p7, %s793_s14, %s108_s21  }
  0x17   : > { %p890_p10 = pnand %p548_p6, %p132_p9  ;;  %s807_s28 = smov [#allocation2]  }
  0x18   : > { %s1196_s27 = scalar_select %p894_p11, 1, 0 }
  0x19   : > { %s1195_s26 = scalar_select %p890_p10, 1, 0 }
  0x1a   : > { %p583_p12 = pneg %p890_p10  ;;  %s146_s29 = sshll.u32 %s807_s28, 4  ;;  %s147_s29 = int_to_ptr.vmem [resolvable:$true] %s146_s29 }
  0x1b   : > { %s1198_s1 = sld [smem:[#allocation16_spill]]  ;;  %s1199_s0 = sld [smem:[#allocation15_spill]] }
  0x1c   : > { %p902_p13 = pnand %p894_p11, %p583_p12 }
  0x1e   : > { %p661_p1 = pneg %p902_p13 }
  0x21   : > { %s160_s6 = sshll.u32 %s1198_s1, 4  ;;  %s659_s9 = scalar_lea.hbm %s1199_s0, 384  ;;  %s909_s6 = int_to_ptr.vmem [resolvable:$true] %s160_s6 }
  0x22   : > { %p660_p0 = scmp.ne.s32.totalorder %s1199_s0, %s659_s9  ;;  %p666_p5 = scmp.lt.u32.totalorder %s659_s9, %s1199_s0 }
  0x24   : > { %p662_p2 = pnand %p661_p1, %p660_p0 }
  0x26   : > { %p663_p3 = pneg %p662_p2 }
  0x28   : > { %p668_p6 = pnand %p666_p5, %p663_p3 }
  0x2a   : > { %671 = shalt.err (!%p668_p6)
}
  0x2b   : > { %s672_s21 = scalar_lea.vmem %s147_s29, 384  ;;  %p680_p8 = scmp.lt.s32.totalorder %s147_s29, %s147_s29 }
  0x2c   : > { %p673_p7 = scmp.ne.s32.totalorder %s147_s29, %s672_s21  ;;  %p681_p4 = scmp.lt.s32.totalorder %s672_s21, %s672_s21 }
  0x2e   : > { %p675_p9 = pnand %p673_p7, %p661_p1  ;;  %p682_p11 = por %p681_p4, %p680_p8 }
  0x30   : > { %p676_p12 = pneg %p675_p9 }
  0x32   : > { %p683_p10 = pnand %p682_p11, %p676_p12 }
  0x34   : > { %686 = shalt.err (!%p683_p10)
}
  0x35   : > { %s808_s23 = smov 128   ;;  %s809_s28 = smov 8  }
  0x36   : > { %586 = dma.hbm_to_vmem [thread:$0]  (!%p902_p13), %s1199_s0, 384, %s147_s29, [#allocation3], %s808_s23, %s808_s23, %s809_s28  }
  0x37   : > { %s687_s7 = scalar_lea.vmem %s909_s6, 16  ;;  %p695_p8 = scmp.lt.s32.totalorder %s909_s6, %s909_s6 }
  0x38   : > { %p688_p0 = scmp.ne.s32.totalorder %s909_s6, %s687_s7  ;;  %p696_p10 = scmp.lt.s32.totalorder %s687_s7, %s687_s7 }
  0x3a   : > { %p690_p2 = pnand %p688_p0, %p661_p1  ;;  %p697_p11 = por %p696_p10, %p695_p8 }
  0x3c   : > { %p691_p4 = pneg %p690_p2 }
  0x3e   : > { %p698_p3 = pnand %p697_p11, %p691_p4 }
  0x40   : > { %701 = shalt.err (!%p698_p3)
}
  0x41   : > { %s810_s8 = smov [#allocation7]   ;;  %s1200_s2 = sld [smem:[#allocation17_spill]] }
  0x42   : > { %589 = dma.vmem_to_smem (!%p902_p13), %s909_s6, 16, %s810_s8, [#allocation6]  }
  0x47   : > { %s702_s10 = scalar_lea.hbm %s1200_s2, 128 }
  0x48   : > { %p703_p5 = scmp.ne.s32.totalorder %s1200_s2, %s702_s10  ;;  %p709_p9 = scmp.lt.u32.totalorder %s702_s10, %s1200_s2 }
  0x4a   : > { %p705_p6 = pnand %p703_p5, %p661_p1 }
  0x4c   : > { %p706_p7 = pneg %p705_p6 }
  0x4e   : > { %p711_p12 = pnand %p709_p9, %p706_p7 }
  0x50   : > { %714 = shalt.err (!%p711_p12)
}
  0x51   : > { %s811_s23 = smov [#allocation8]   ;;  %p1201_p0 = scmp.ne.s32.totalorder %s1195_s26, 0 }
  0x52   : > { %592 = dma.hbm_to_smem (!%p902_p13), %s1200_s2, 128, %s811_s23, [#allocation5]  }
  0x53   : > { %182 = sbr.rel (%p1201_p0) target bundleno = 213 (0xd5), region = 32  ;;  %p1202_p2 = scmp.ne.s32.totalorder (!%p1201_p0), %s1196_s27, 0 }
  0x5a   : > { %768 = dma.done.wait (%p1202_p2), [#allocation3], 384  }
  0x5b   : > { %770 = vsyncadd (%p1202_p2), [#allocation3], 4294966912 }
  0x5c   : > { %772 = dma.done.wait (%p1202_p2), [#allocation6], 16  }
  0x5d   : > { %774 = vsyncadd (%p1202_p2), [#allocation6], 4294967280 }
  0x5e   : > { %776 = dma.done.wait (%p1202_p2), [#allocation5], 128  }
  0x5f   : > { %778 = vsyncadd (%p1202_p2), [#allocation5], 4294967168 }
  0x60   : > { %196 = sfence }
  0x61   : > { %s1187_s26 = sand.u32 1, %s789_s13   ;;  %s976_s30 = sshll.u32 %s797_s15, 7  ;;  %v986_v0 = vld [vmem:[#allocation2] sm:$0xff]  ;;  %v992_v1 = vld [vmem:[#allocation2 + $0x8] sm:$0xff]  ;;  %v995_v3 = vld [vmem:[#allocation2 + $0x10] sm:$0xff] }
  0x62   : > { %s980_s4 = smul.u32 24, %s1187_s26  ;;  %s216_s5 = sld [smem:[#allocation8 + %s976_s30]] }
  0x63   : > { %s219_s27 = sadd.s32 1, %s976_s30  ;;  %s224_s7 = sadd.s32 2, %s976_s30 }
  0x64   : > { %s220_s8 = sld [smem:[#allocation8 + %s219_s27]]  ;;  %s229_s29 = sadd.s32 9, %s976_s30 }
  0x65   : > { %s225_s9 = sld [smem:[#allocation8 + %s224_s7]]  ;;  %s233_s11 = sadd.s32 3, %s976_s30 }
  0x66   : > { %s988_s10 = sld [smem:[#allocation8 + %s229_s29]]  ;;  %s237_s19 = sadd.s32 4, %s976_s30 }
  0x67   : > { %s234_s18 = sld [smem:[#allocation8 + %s233_s11]]  ;;  %s242_s23 = sadd.s32 5, %s976_s30 }
  0x68   : > { %v217_v2 = vstv %s216_s5  ;;  %s238_s21 = sld [smem:[#allocation8 + %s237_s19]]  ;;  %s247_s28 = sadd.s32 10, %s976_s30 }
  0x69   : > { %v218_v4 = vmul.f32 %v217_v2, %v986_v0  ;;  %s243_s6 = sld [smem:[#allocation8 + %s242_s23]]  ;;  %s251_s7 = sadd.s32 6, %s976_s30 }
  0x6a   : > { %v221_v5 = vstv %s220_s8  ;;  %s999_s27 = sld [smem:[#allocation8 + %s247_s28]]  ;;  %s255_s5 = sadd.s32 7, %s976_s30 }
  0x6b   : > { %v222_v6 = vmul.f32 %v221_v5, %v992_v1  ;;  %v226_v7 = vstv %s225_s9  ;;  %s252_s29 = sld [smem:[#allocation8 + %s251_s7]]  ;;  %s260_s19 = sadd.s32 8, %s976_s30 }
  0x6c   : > { %v227_v8 = vmul.f32 %v226_v7, %v995_v3  ;;  %s256_s11 = sld [smem:[#allocation8 + %s255_s5]]  ;;  %s265_s23 = sadd.s32 11, %s976_s30  ;;  %v231_v11 = vstv %s988_s10 }
  0x6d   : > { %v223_v9 = vadd.f32 %v222_v6, %v218_v4  ;;  %v235_v10 = vstv %s234_s18  ;;  %s261_s26 = sld [smem:[#allocation8 + %s260_s19]] }
  0x6e   : > { %v236_v12 = vmul.f32 %v235_v10, %v986_v0  ;;  %v239_v13 = vstv %s238_s21  ;;  %s266_s8 = sld [smem:[#allocation8 + %s265_s23]] }
  0x6f   : > { %s1009_s28 = sld [smem:[#allocation7]]  ;;  %v228_v14 = vadd.f32 %v227_v8, %v223_v9  ;;  %v240_v15 = vmul.f32 %v239_v13, %v992_v1  ;;  %v244_v16 = vstv %s243_s6  ;;  %s1012_s9 = sld [smem:[#allocation7 + $0x1]] }
  0x70   : > { %v245_v17 = vmul.f32 %v244_v16, %v995_v3  ;;  %v249_v21 = vstv %s999_s27 }
  0x71   : > { %v1015_v18 = vadd.f32 %v231_v11, %v228_v14  ;;  %v241_v19 = vadd.f32 %v240_v15, %v236_v12  ;;  %v253_v20 = vstv %s252_s29 }
  0x72   : > { %v254_v22 = vmul.f32 %v253_v20, %v986_v0  ;;  %v257_v23 = vstv %s256_s11 }
  0x73   : > { %v246_v24 = vadd.f32 %v245_v17, %v241_v19  ;;  %v258_v25 = vmul.f32 %v257_v23, %v992_v1  ;;  %v262_v26 = vstv %s261_s26  ;;  %s1034_s26 = scalar_lea.vmem [#allocation9], %s980_s4 }
  0x74   : > { %v263_v27 = vmul.f32 %v262_v26, %v995_v3  ;;  %v267_v30 = vstv %s266_s8 }
  0x75   : > { %p275_p13 = scmp.ge.s32.totalorder %s1009_s28, 1024  ;;  %p277_p1 = scmp.le.s32.totalorder %s1009_s28, 0  ;;  %v1023_v28 = vadd.f32 %v249_v21, %v246_v24  ;;  %v259_v29 = vadd.f32 %v258_v25, %v254_v22 }
  0x76   : > { %p274_p4 = scmp.le.s32.totalorder %s1012_s9, 0  ;;  %p278_p8 = scmp.ge.s32.totalorder %s1012_s9, 1024 }
  0x77   : > { %v264_v31 = vadd.f32 %v263_v27, %v259_v29 }
  0x78   : > { %p276_p10 = por %p275_p13, %p274_p4  ;;  %p279_p11 = pnand %p278_p8, %p277_p1 }
  0x79   : > { %v1027_v32 = vadd.f32 %v267_v30, %v264_v31  ;;  %286 = vst [vmem:[%s1034_s26] sm:$0xff] (%p276_p10), %v1015_v18  ;;  %558 = vst [vmem:[%s1034_s26 + $0x8] sm:$0xff] (%p276_p10), %v1023_v28 }
  0x7a   : > { %p280_p3 = pneg %p279_p11  ;;  %285 = sbr.rel (!%p276_p10) target bundleno = 129 (0x81), region = 48 }
  0x7b   : > { %559 = vst [vmem:[%s1034_s26 + $0x10] sm:$0xff] (%p276_p10), %v1027_v32 }
  0x7c   : > { %p1029_p5 = por %p280_p3, %p276_p10 }
  0x81 PF: > { %292 = sbr.rel (%p279_p11) target bundleno = 157 (0x9d), region = 52  ;;  %s293_s4 = sadd.s32 (!%p279_p11), 12, %s976_s30 }
  0x82   : > { %s297_s18 = sadd.s32 (!%p279_p11), 13, %s976_s30  ;;  %s294_s21 = sld [smem:[#allocation8 + %s293_s4]] (!%p279_p11) }
  0x83   : > { %s298_s6 = sld [smem:[#allocation8 + %s297_s18]] (!%p279_p11)  ;;  %s302_s27 = sadd.s32 (!%p279_p11), 14, %s976_s30 }
  0x84   : > { %s307_s7 = sadd.s32 (!%p279_p11), 21, %s976_s30  ;;  %s303_s29 = sld [smem:[#allocation8 + %s302_s27]] (!%p279_p11) }
  0x85   : > { %s1046_s5 = sld [smem:[#allocation8 + %s307_s7]] (!%p279_p11)  ;;  %s311_s11 = sadd.s32 (!%p279_p11), 15, %s976_s30 }
  0x86   : > { %s315_s19 = sadd.s32 (!%p279_p11), 16, %s976_s30  ;;  %s312_s23 = sld [smem:[#allocation8 + %s311_s11]] (!%p279_p11) }
  0x87   : > { %s316_s8 = sld [smem:[#allocation8 + %s315_s19]] (!%p279_p11)  ;;  %s320_s0 = sadd.s32 (!%p279_p11), 17, %s976_s30 }
  0x88   : > { %s325_s1 = sadd.s32 22, %s976_s30  ;;  %v295_v33 = vstv %s294_s21  ;;  %s321_s4 = sld [smem:[#allocation8 + %s320_s0]] }
  0x89   : > { %v299_v34 = vstv %s298_s6  ;;  %s1052_s18 = sld [smem:[#allocation8 + %s325_s1]]  ;;  %v296_v35 = vmul.f32 %v295_v33, %v986_v0  ;;  %s329_s27 = sadd.s32 18, %s976_s30 }
  0x8a   : > { %v300_v36 = vmul.f32 %v299_v34, %v992_v1  ;;  %s333_s7 = sadd.s32 19, %s976_s30  ;;  %v304_v37 = vstv %s303_s29  ;;  %s330_s2 = sld [smem:[#allocation8 + %s329_s27]] }
  0x8b   : > { %s334_s11 = sld [smem:[#allocation8 + %s333_s7]]  ;;  %v305_v39 = vmul.f32 %v304_v37, %v995_v3  ;;  %s338_s19 = sadd.s32 20, %s976_s30  ;;  %v309_v40 = vstv %s1046_s5 }
  0x8c   : > { %v301_v38 = vadd.f32 %v300_v36, %v296_v35  ;;  %s343_s20 = sadd.s32 23, %s976_s30  ;;  %v313_v41 = vstv %s312_s23  ;;  %s339_s0 = sld [smem:[#allocation8 + %s338_s19]] }
  0x8d   : > { %v317_v42 = vstv %s316_s8  ;;  %s344_s1 = sld [smem:[#allocation8 + %s343_s20]]  ;;  %v314_v44 = vmul.f32 %v313_v41, %v986_v0 }
  0x8e   : > { %v306_v43 = vadd.f32 %v305_v39, %v301_v38  ;;  %v318_v45 = vmul.f32 %v317_v42, %v992_v1  ;;  %v322_v46 = vstv %s321_s4 }
  0x8f   : > { %v323_v49 = vmul.f32 %v322_v46, %v995_v3  ;;  %v327_v50 = vstv %s1052_s18 }
  0x90   : > { %v310_v47 = vadd.f32 %v309_v40, %v306_v43  ;;  %v319_v48 = vadd.f32 %v318_v45, %v314_v44  ;;  %v331_v51 = vstv %s330_s2 }
  0x91   : > { %v335_v52 = vstv %s334_s11  ;;  %v332_v55 = vmul.f32 %v331_v51, %v986_v0 }
  0x92   : > { %v347_v53 = vadd.f32 %v310_v47, %v1015_v18  ;;  %v324_v54 = vadd.f32 %v323_v49, %v319_v48  ;;  %v336_v56 = vmul.f32 %v335_v52, %v992_v1  ;;  %v340_v57 = vstv %s339_s0 }
  0x93   : > { %v341_v60 = vmul.f32 %v340_v57, %v995_v3  ;;  %v345_v61 = vstv %s344_s1 }
  0x94   : > { %348 = vst [vmem:[%s1034_s26] sm:$0xff] %v347_v53  ;;  %v328_v58 = vadd.f32 %v327_v50, %v324_v54  ;;  %v337_v59 = vadd.f32 %v336_v56, %v332_v55 }
  0x96   : > { %v349_v62 = vadd.f32 %v328_v58, %v1023_v28  ;;  %v342_v63 = vadd.f32 %v341_v60, %v337_v59 }
  0x98   : > { %560 = vst [vmem:[%s1034_s26 + $0x8] sm:$0xff] %v349_v62  ;;  %v346_v2 = vadd.f32 %v345_v61, %v342_v63 }
  0x9a   : > { %v352_v4 = vadd.f32 %v346_v2, %v1027_v32 }
  0x9c   : > { %561 = vst [vmem:[%s1034_s26 + $0x10] sm:$0xff] %v352_v4 }
  0x9d PF: > { %356 = sbr.rel (%p1029_p5) target bundleno = 186 (0xba), region = 56  ;;  %v357_v5 = vlaneseq (!%p1029_p5)  ;;  %s368_s2 = sadd.s32 (!%p1029_p5), 12, %s976_s30  ;;  %v363_v10 = vstv (!%p1029_p5), %s1009_s28  ;;  %v365_v11 = vstv (!%p1029_p5), %s1012_s9 }
  0x9e   : > { %s372_s20 = sadd.s32 (!%p1029_p5), 13, %s976_s30  ;;  %s369_s21 = sld [smem:[#allocation8 + %s368_s2]] (!%p1029_p5) }
  0x9f   : > { %s373_s6 = sld [smem:[#allocation8 + %s372_s20]] (!%p1029_p5)  ;;  %v358_v6 = vshrl.u32 (!%p1029_p5), %v357_v5, 7  ;;  %v360_v7 = vand.u32 (!%p1029_p5), 127, %v357_v5  ;;  %s377_s29 = sadd.s32 (!%p1029_p5), 14, %s976_s30 }
  0xa0   : > { %s382_s10 = sadd.s32 (!%p1029_p5), 21, %s976_s30  ;;  %s378_s5 = sld [smem:[#allocation8 + %s377_s29]] (!%p1029_p5) }
  0xa1   : > { %s1081_s23 = sld [smem:[#allocation8 + %s382_s10]] (!%p1029_p5)  ;;  %v361_v8 = vmul.u32 (!%p1029_p5), 128, %v358_v6  ;;  %s386_s8 = sadd.s32 (!%p1029_p5), 15, %s976_s30 }
  0xa2   : > { %s390_s4 = sadd.s32 (!%p1029_p5), 16, %s976_s30  ;;  %s387_s18 = sld [smem:[#allocation8 + %s386_s8]] (!%p1029_p5) }
  0xa3   : > { %s391_s27 = sld [smem:[#allocation8 + %s390_s4]] (!%p1029_p5)  ;;  %v362_v9 = vadd.s32 (!%p1029_p5), %v361_v8, %v360_v7  ;;  %s395_s7 = sadd.s32 (!%p1029_p5), 17, %s976_s30 }
  0xa4   : > { %s400_s11 = sadd.s32 22, %s976_s30  ;;  %v370_v12 = vstv %s369_s21  ;;  %s396_s19 = sld [smem:[#allocation8 + %s395_s7]] }
  0xa5   : > { %v374_v13 = vstv %s373_s6  ;;  %s1089_s0 = sld [smem:[#allocation8 + %s400_s11]]  ;;  %v371_v14 = vmul.f32 %v370_v12, %v986_v0  ;;  %s404_s1 = sadd.s32 18, %s976_s30  ;;  %vm364_vm0 = vcmp.ge.s32.totalorder %v362_v9, %v363_v10  ;;  %vm366_vm1 = vcmp.lt.s32.totalorder %v362_v9, %v365_v11 }
  0xa6   : > { %v375_v15 = vmul.f32 %v374_v13, %v992_v1  ;;  %s408_s2 = sadd.s32 19, %s976_s30  ;;  %v379_v16 = vstv %s378_s5  ;;  %s405_s20 = sld [smem:[#allocation8 + %s404_s1]]  ;;  %vm1101_vm2 = vmand %vm364_vm0, %vm366_vm1 }
  0xa7   : > { %s409_s29 = sld [smem:[#allocation8 + %s408_s2]]  ;;  %v380_v19 = vmul.f32 %v379_v16, %v995_v3  ;;  %s413_s28 = sadd.s32 20, %s976_s30  ;;  %v384_v20 = vstv %s1081_s23 }
  0xa8   : > { %v376_v17 = vadd.f32 %v375_v15, %v371_v14  ;;  %s418_s9 = sadd.s32 23, %s976_s30  ;;  %v388_v21 = vstv %s387_s18  ;;  %s414_s21 = sld [smem:[#allocation8 + %s413_s28]] }
  0xa9   : > { %v392_v22 = vstv %s391_s27  ;;  %s419_s6 = sld [smem:[#allocation8 + %s418_s9]]  ;;  %v389_v24 = vmul.f32 %v388_v21, %v986_v0 }
  0xaa   : > { %v381_v23 = vadd.f32 %v380_v19, %v376_v17  ;;  %v393_v25 = vmul.f32 %v392_v22, %v992_v1  ;;  %v397_v27 = vstv %s396_s19 }
  0xab   : > { %v398_v31 = vmul.f32 %v397_v27, %v995_v3  ;;  %v402_v33 = vstv %s1089_s0 }
  0xac   : > { %v385_v29 = vadd.f32 %v384_v20, %v381_v23  ;;  %v394_v30 = vadd.f32 %v393_v25, %v389_v24  ;;  %v406_v34 = vstv %s405_s20 }
  0xad   : > { %v410_v35 = vstv %s409_s29  ;;  %v407_v38 = vmul.f32 %v406_v34, %v986_v0 }
  0xae   : > { %v422_v36 = vsel %vm1101_vm2, %v385_v29, 0.0  ;;  %v399_v37 = vadd.f32 %v398_v31, %v394_v30  ;;  %v411_v39 = vmul.f32 %v410_v35, %v992_v1  ;;  %v415_v41 = vstv %s414_s21 }
  0xaf   : > { %v423_v40 = vadd.f32 %v422_v36, %v1015_v18  ;;  %v416_v44 = vmul.f32 %v415_v41, %v995_v3  ;;  %v420_v45 = vstv %s419_s6 }
  0xb0   : > { %v403_v42 = vadd.f32 %v402_v33, %v399_v37  ;;  %v412_v43 = vadd.f32 %v411_v39, %v407_v38 }
  0xb1   : > { %424 = vst [vmem:[%s1034_s26] sm:$0xff] %v423_v40 }
  0xb2   : > { %v425_v46 = vsel %vm1101_vm2, %v403_v42, 0.0  ;;  %v417_v47 = vadd.f32 %v416_v44, %v412_v43 }
  0xb3   : > { %v426_v48 = vadd.f32 %v425_v46, %v1023_v28 }
  0xb4   : > { %v421_v49 = vadd.f32 %v420_v45, %v417_v47 }
  0xb5   : > { %562 = vst [vmem:[%s1034_s26 + $0x8] sm:$0xff] %v426_v48 }
  0xb6   : > { %v429_v0 = vsel %vm1101_vm2, %v421_v49, 0.0 }
  0xb7   : > { %v430_v1 = vadd.f32 %v429_v0, %v1027_v32 }
  0xb9   : > { %563 = vst [vmem:[%s1034_s26 + $0x10] sm:$0xff] %v430_v1 }
  0xba PF: > { %s568_s30 = smul.u32 384, %s797_s15  ;;  %s448_s10 = sshll.u32 %s1034_s26, 4  ;;  %s1129_s10 = int_to_ptr.vmem [resolvable:$true] %s448_s10 }
  0xbb   : > { %s1206_s4 = sand.u32 1, %s789_s13   ;;  %s715_s27 = scalar_lea.vmem %s1129_s10, 384 }
  0xbc   : > { %s1127_s8 = scalar_lea.hbm %s1182_s3, %s568_s30  ;;  %s1133_s18 = scalar_lea.sflag [#allocation4], %s1206_s4 }
  0xbd   : > { %p716_p6 = scmp.ne.s32.totalorder %s1129_s10, %s715_s27  ;;  %p1207_p7 = scmp.ne.s32.totalorder %s1193_s22, 0 }
  0xbe   : > { %s812_s15 = smov [#allocation9]  }
  0xbf   : > { %p717_p9 = pnand %p716_p6, %p1207_p7  ;;  %s719_s26 = sshll.u32 %s812_s15, 4  ;;  %s720_s26 = int_to_ptr.vmem [resolvable:$false] %s719_s26 }
  0xc0   : > { %s721_s7 = scalar_lea.vmem %s720_s26, 768  ;;  %p722_p0 = scmp.lt.s32.totalorder %s1129_s10, %s720_s26 }
  0xc1   : > { %p718_p12 = pneg %p717_p9  ;;  %p723_p2 = scmp.lt.s32.totalorder %s721_s7, %s715_s27 }
  0xc3   : > { %p724_p13 = por %p723_p2, %p722_p0 }
  0xc5   : > { %p725_p1 = pnand %p724_p13, %p718_p12 }
  0xc7   : > { %728 = shalt.err (!%p725_p1)
}
  0xc8   : > { %s729_s11 = scalar_lea.hbm %s1127_s8, 384  ;;  %s733_s1 = scalar_lea.hbm %s1182_s3, 3072 }
  0xc9   : > { %p730_p4 = scmp.ne.s32.totalorder %s1127_s8, %s729_s11  ;;  %p734_p11 = scmp.lt.u32.totalorder %s1127_s8, %s1182_s3 }
  0xca   : > { %p735_p3 = scmp.lt.u32.totalorder %s733_s1, %s729_s11  ;;  %p737_p6 = scmp.lt.u32.totalorder %s729_s11, %s1127_s8 }
  0xcb   : > { %p731_p8 = pnand %p730_p4, %p1207_p7 }
  0xcc   : > { %p736_p5 = por %p735_p3, %p734_p11 }
  0xcd   : > { %p732_p10 = pneg %p731_p8 }
  0xce   : > { %p738_p9 = por %p737_p6, %p736_p5 }
  0xd0   : > { %p739_p12 = pnand %p738_p9, %p732_p10 }
  0xd2   : > { %742 = shalt.err (!%p739_p12)
}
  0xd3   : > { %s813_s29 = smov 128   ;;  %s814_s28 = smov 8  }
  0xd4   : > { %581 = dma.vmem_to_hbm [thread:$0]  (%p1207_p7), %s1129_s10, 384, %s1127_s8, %s1133_s18, %s813_s29, %s813_s29, %s814_s28  }
  0xd5 PF: > { %p603_p0 = scmp.ge.s32.totalorder %s805_s17, 2  ;;  %s463_s9 = sand.u32 1, %s785_s12  }
  0xd6   : > { %p1208_p2 = scmp.ne.s32.totalorder %s1194_s24, 0  ;;  %s464_s21 = scalar_lea.sflag [#allocation4], %s463_s9 }
  0xd8   : > { %p594_p13 = pnand %p603_p0, %p1208_p2 }
  0xda   : > { %780 = dma.done.wait (!%p594_p13), %s464_s21, 384  }
  0xdb   : > { %782 = vsyncadd (!%p594_p13), %s464_s21, 4294966912  ;;  %s19_s17 = sadd.s32 1, %s805_s17   ;;  %s1209_s22 = sld [smem:[#allocation14_spill]] }
  0xdc   : > { %p16_p1 = scmp.ge.s32.totalorder %s19_s17, 10   ;;  %s1210_s12 = smov %s789_s13 }
  0xdd   : > { %s1211_s13 = smov %s793_s14  ;;  %s1212_s14 = smov %s888_s25 }
  0xde   : > { %s1213_s15 = smov %s801_s16  ;;  %18 = sbr.rel (!%p16_p1) target bundleno = 11 (0xb), region = 100 }
  0xe1   : > { %s1214_s16 = smov %s1209_s22 }
  0xe5   :  { %469 = vsyncpa [#allocation3], 1 }
  0xe6   :  { %471 = vsyncpa [#allocation3 + $0x1], 1 }
  0xe7   :  { %472 = vsyncpa [#allocation4], 1 }
  0xe8   :  { %474 = vsyncpa [#allocation4 + $0x1], 1 }
  0xe9   :  { %475 = vsyncpa [#allocation5], 1 }
  0xea   :  { %477 = vsyncpa [#allocation5 + $0x1], 1 }
  0xeb   :  { %478 = vsyncpa [#allocation6], 1 }
  0xec   :  { %480 = vsyncpa [#allocation6 + $0x1], 1 }

</bundles_post_ra>
